<compile_context>
chip_gen: v5e
topology: v5e:2x2
jax: 0.10.0
libtpu: 0.0.40
codegen_flags: <defaults>
</compile_context>

<pallas_src>
import jax
import jax.numpy as jnp
from jax.experimental import pallas as pl
from jax.experimental.pallas import tpu as pltpu


def _round_up(n, m):
    return ((n + m - 1) // m) * m


def _cdiv(a, b):
    return (a + b - 1) // b


def _const2d(i):
    return (0, 0)


def _stream_cols(i):
    return (0, i)


def _mlp_kernel(x_ref,
                w1_ref, b1_ref,
                w2_ref, b2_ref,
                w3_ref, b3_ref,
                w4_ref, b4_ref,
                o_ref):
    # x tile: (G*D_in, tile_cols) bf16, feature-major (batch on lanes).
    # All weights are block-diagonal packs of G copies of the layer weight, so
    # each layer is a single MXU matmul over all G groups at once.
    x = x_ref[...]
    h = jnp.dot(w1_ref[...], x, preferred_element_type=jnp.float32)
    h = jnp.maximum(h + b1_ref[...], 0.0)

    h = jnp.dot(w2_ref[...], h.astype(jnp.bfloat16),
                preferred_element_type=jnp.float32)
    h = jnp.maximum(h + b2_ref[...], 0.0)

    h = jnp.dot(w3_ref[...], h.astype(jnp.bfloat16),
                preferred_element_type=jnp.float32)
    h = jnp.maximum(h + b3_ref[...], 0.0)

    z = jnp.dot(w4_ref[...], h.astype(jnp.bfloat16),
                preferred_element_type=jnp.float32)
    z = z + b4_ref[...]

    # Exact sigmoid via a single EUP tanh (no approx reciprocal).
    o_ref[...] = 0.5 * (1.0 + jnp.tanh(0.5 * z))


def dnn_forward(x, params, *, tile_b=24576, groups=6):
    """Fused MLP forward. x: (B, D_in) f32 -> (B, D_out) f32 in [0, 1].

    params: torch-layout weights w1..w4 of shape (out, in) and biases b1..b4
    of shape (out, 1), all float32.
    """
    B, d_in = x.shape
    hidden = params["w1"].shape[0]
    d_out = params["w4"].shape[0]

    G = groups                       # 6 -> packed hidden = 120 <= 128 (v5e MXU face)
    quantum = 128 * G                # batch rows per lane-dense column block

    # --- tile selection --------------------------------------------------
    b_quant = _round_up(B, quantum)                       # minimal padded batch
    tile = _round_up(max(min(tile_b, b_quant), quantum), quantum)
    # v7x: keep >= 2 grid steps when the batch allows it (2 TCs share the grid).
    if b_quant >= 2 * quantum:
        tile = min(tile, _round_up(_cdiv(b_quant, 2), quantum))
    b_pad = _round_up(B, tile)
    num_tiles = b_pad // tile
    tile_cols = tile // G
    total_cols = b_pad // G

    # --- input prep: feature-major, lane-dense columns ---------------------
    x32 = x
    if b_pad != B:
        x32 = jnp.pad(x32, ((0, b_pad - B), (0, 0)))
    # (B, D_in) -> (B/G, G*D_in) is a free row-major reshape (G consecutive
    # batch rows become one column of the packed problem).
    x_fm = x32.reshape(b_pad // G, G * d_in).T.astype(jnp.bfloat16)  # (G*D_in, B/G)

    # --- block-diagonal weight packing (done once, outside the kernel) -----
    eye = jnp.eye(G, dtype=jnp.float32)

    def pack_w(w):                   # (out, in) -> (G*out, G*in) block-diag, bf16
        return jnp.kron(eye, w.astype(jnp.float32)).astype(jnp.bfloat16)

    def pack_b(b):                   # (out, 1) -> (G*out, 1), f32
        return jnp.tile(b.astype(jnp.float32), (G, 1))

    ws = [pack_w(params[f"w{i}"]) for i in (1, 2, 3, 4)]
    bs = [pack_b(params[f"b{i}"]) for i in (1, 2, 3, 4)]

    args = (x_fm, ws[0], bs[0], ws[1], bs[1], ws[2], bs[2], ws[3], bs[3])

    # x streams along the column grid; packed weights/biases use constant
    # index maps so they stay VMEM-resident across grid steps.
    in_specs = [pl.BlockSpec((G * d_in, tile_cols), _stream_cols)]
    for a in args[1:]:
        in_specs.append(pl.BlockSpec(a.shape, _const2d))

    out_specs = pl.BlockSpec((G * d_out, tile_cols), _stream_cols)
    out_shape = jax.ShapeDtypeStruct((G * d_out, total_cols), jnp.float32)

    flops = 2 * b_pad * (d_in * hidden + 2 * hidden * hidden + hidden * d_out)
    bytes_accessed = (int(x_fm.size) * 2
                      + sum(int(w.size) * 2 for w in ws)
                      + sum(int(b.size) * 4 for b in bs)
                      + G * d_out * total_cols * 4)
    cost = pl.CostEstimate(flops=flops,
                           transcendentals=b_pad * d_out,
                           bytes_accessed=bytes_accessed)

    out2 = pl.pallas_call(
        _mlp_kernel,
        out_shape=out_shape,
        grid=(num_tiles,),
        in_specs=in_specs,
        out_specs=out_specs,
        compiler_params=pltpu.CompilerParams(
            dimension_semantics=("parallel",)),
        cost_estimate=cost,
    )(*args)

    # (G*D_out, B_pad/G) -> (B_pad, D_out): column q, group g holds batch row
    # b = q*G + g, so transpose + row-major reshape restores batch order.
    out = out2.T.reshape(b_pad, d_out)
    return out[:B]


def init_params(key, d_in, d_out, hidden=20):
    """Deterministic synthetic init (PyTorch-like uniform bounds), torch layout."""
    dims = [(hidden, d_in), (hidden, hidden), (hidden, hidden), (d_out, hidden)]
    params = {}
    for i, (fan_out, fan_in) in enumerate(dims, start=1):
        key, kw, kb = jax.random.split(key, 3)
        bound = 1.0 / float(fan_in) ** 0.5
        params[f"w{i}"] = jax.random.uniform(
            kw, (fan_out, fan_in), jnp.float32, -bound, bound)   # (out, in)
        params[f"b{i}"] = jax.random.uniform(
            kb, (fan_out, 1), jnp.float32, -bound, bound)        # (out, 1)
    return params


def dnn_forward_ref(x, params):
    """Pure-JAX reference with matching numerics (bf16 matmuls, f32 accumulate)."""
    def layer(h, w, b):
        y = jnp.dot(h.astype(jnp.bfloat16), w.astype(jnp.bfloat16).T,
                    preferred_element_type=jnp.float32)
        return y + b.reshape(1, -1)

    h = jnp.maximum(layer(x, params["w1"], params["b1"]), 0.0)
    h = jnp.maximum(layer(h, params["w2"], params["b2"]), 0.0)
    h = jnp.maximum(layer(h, params["w3"], params["b3"]), 0.0)
    return jax.nn.sigmoid(layer(h, params["w4"], params["b4"]))


# TODO(synk): selfTrain / selfAttack (Adam training loop, SAIF / L1_MAD attacks)
# are host-side training utilities, not part of the forward pass; not ported.

if __name__ == "__main__":
    # Small shapes consistent with the module: tabular input of 16 features,
    # single sigmoid output.  B=900 exercises a multi-step grid (the 2-tile
    # cap kicks in) plus the batch-padding path.
    B, D_IN, D_OUT = 900, 16, 1

    key = jax.random.PRNGKey(0)
    key, kx = jax.random.split(key)
    x = jax.random.normal(kx, (B, D_IN), jnp.float32)
    params = init_params(key, D_IN, D_OUT)

    out = jax.block_until_ready(dnn_forward(x, params))

    ref = dnn_forward_ref(x, params)
    assert out.shape == (B, D_OUT)
    assert jnp.allclose(out, ref, atol=5e-3, rtol=0.0), "mismatch vs reference"

    print("KERNEL_OK")
</pallas_src>

<mosaic_0001>
module attributes {stable_mosaic.version = 11 : i64} {
  func.func @_mlp_kernel(%arg0: i32, %arg1: memref<96x128xbf16, #tpu.memory_space<vmem>>, %arg2: memref<120x96xbf16, #tpu.memory_space<vmem>>, %arg3: memref<120x1xf32, #tpu.memory_space<vmem>>, %arg4: memref<120x120xbf16, #tpu.memory_space<vmem>>, %arg5: memref<120x1xf32, #tpu.memory_space<vmem>>, %arg6: memref<120x120xbf16, #tpu.memory_space<vmem>>, %arg7: memref<120x1xf32, #tpu.memory_space<vmem>>, %arg8: memref<6x120xbf16, #tpu.memory_space<vmem>>, %arg9: memref<6x1xf32, #tpu.memory_space<vmem>>, %arg10: memref<6x128xf32, #tpu.memory_space<vmem>>) attributes {dimension_semantics = [#tpu.dimension_semantics<parallel>], iteration_bounds = array<i64: 2>, scalar_prefetch = 0 : i64, scratch_operands = 0 : i64, tpu.core_type = #tpu.core_type<tc>, window_params = [{transform_indices = @transform_0, window_bounds = array<i64: 96, 128>}, {pipeline_mode = #tpu.pipeline_mode<synchronous>, transform_indices = @transform_1, window_bounds = array<i64: 120, 96>}, {pipeline_mode = #tpu.pipeline_mode<synchronous>, transform_indices = @transform_2, window_bounds = array<i64: 120, 1>}, {pipeline_mode = #tpu.pipeline_mode<synchronous>, transform_indices = @transform_3, window_bounds = array<i64: 120, 120>}, {pipeline_mode = #tpu.pipeline_mode<synchronous>, transform_indices = @transform_4, window_bounds = array<i64: 120, 1>}, {pipeline_mode = #tpu.pipeline_mode<synchronous>, transform_indices = @transform_5, window_bounds = array<i64: 120, 120>}, {pipeline_mode = #tpu.pipeline_mode<synchronous>, transform_indices = @transform_6, window_bounds = array<i64: 120, 1>}, {pipeline_mode = #tpu.pipeline_mode<synchronous>, transform_indices = @transform_7, window_bounds = array<i64: 6, 120>}, {pipeline_mode = #tpu.pipeline_mode<synchronous>, transform_indices = @transform_8, window_bounds = array<i64: 6, 1>}, {transform_indices = @transform_9, window_bounds = array<i64: 6, 128>}]} {
    %c0 = arith.constant 0 : index
    %c0_0 = arith.constant 0 : index
    %0 = vector.load %arg1[%c0, %c0_0] : memref<96x128xbf16, #tpu.memory_space<vmem>>, vector<96x128xbf16>
    %c0_1 = arith.constant 0 : index
    %c0_2 = arith.constant 0 : index
    %1 = vector.load %arg2[%c0_1, %c0_2] : memref<120x96xbf16, #tpu.memory_space<vmem>>, vector<120x96xbf16>
    %cst = arith.constant dense<0.000000e+00> : vector<120x128xf32>
    %2 = tpu.matmul %1, %0, %cst {dimension_numbers = #tpu.dot_dimension_numbers<[1], [0], [0], [1], [0, 0, 1, 1], [], []>} : vector<120x96xbf16>, vector<96x128xbf16>, vector<120x128xf32> -> vector<120x128xf32>
    %c0_3 = arith.constant 0 : index
    %c0_4 = arith.constant 0 : index
    %3 = vector.load %arg3[%c0_3, %c0_4] : memref<120x1xf32, #tpu.memory_space<vmem>>, vector<120x1xf32>
    %4 = vector.broadcast %3 : vector<120x1xf32> to vector<120x128xf32>
    %5 = arith.addf %2, %4 : vector<120x128xf32>
    %cst_5 = arith.constant 0.000000e+00 : f32
    %6 = vector.broadcast %cst_5 : f32 to vector<120x128xf32>
    %7 = arith.maximumf %5, %6 : vector<120x128xf32>
    %c0_6 = arith.constant 0 : index
    %c0_7 = arith.constant 0 : index
    %8 = vector.load %arg4[%c0_6, %c0_7] : memref<120x120xbf16, #tpu.memory_space<vmem>>, vector<120x120xbf16>
    %9 = arith.truncf %7 : vector<120x128xf32> to vector<120x128xbf16>
    %cst_8 = arith.constant dense<0.000000e+00> : vector<120x128xf32>
    %10 = tpu.matmul %8, %9, %cst_8 {dimension_numbers = #tpu.dot_dimension_numbers<[1], [0], [0], [1], [0, 0, 1, 1], [], []>} : vector<120x120xbf16>, vector<120x128xbf16>, vector<120x128xf32> -> vector<120x128xf32>
    %c0_9 = arith.constant 0 : index
    %c0_10 = arith.constant 0 : index
    %11 = vector.load %arg5[%c0_9, %c0_10] : memref<120x1xf32, #tpu.memory_space<vmem>>, vector<120x1xf32>
    %12 = vector.broadcast %11 : vector<120x1xf32> to vector<120x128xf32>
    %13 = arith.addf %10, %12 : vector<120x128xf32>
    %cst_11 = arith.constant 0.000000e+00 : f32
    %14 = vector.broadcast %cst_11 : f32 to vector<120x128xf32>
    %15 = arith.maximumf %13, %14 : vector<120x128xf32>
    %c0_12 = arith.constant 0 : index
    %c0_13 = arith.constant 0 : index
    %16 = vector.load %arg6[%c0_12, %c0_13] : memref<120x120xbf16, #tpu.memory_space<vmem>>, vector<120x120xbf16>
    %17 = arith.truncf %15 : vector<120x128xf32> to vector<120x128xbf16>
    %cst_14 = arith.constant dense<0.000000e+00> : vector<120x128xf32>
    %18 = tpu.matmul %16, %17, %cst_14 {dimension_numbers = #tpu.dot_dimension_numbers<[1], [0], [0], [1], [0, 0, 1, 1], [], []>} : vector<120x120xbf16>, vector<120x128xbf16>, vector<120x128xf32> -> vector<120x128xf32>
    %c0_15 = arith.constant 0 : index
    %c0_16 = arith.constant 0 : index
    %19 = vector.load %arg7[%c0_15, %c0_16] : memref<120x1xf32, #tpu.memory_space<vmem>>, vector<120x1xf32>
    %20 = vector.broadcast %19 : vector<120x1xf32> to vector<120x128xf32>
    %21 = arith.addf %18, %20 : vector<120x128xf32>
    %cst_17 = arith.constant 0.000000e+00 : f32
    %22 = vector.broadcast %cst_17 : f32 to vector<120x128xf32>
    %23 = arith.maximumf %21, %22 : vector<120x128xf32>
    %c0_18 = arith.constant 0 : index
    %c0_19 = arith.constant 0 : index
    %24 = vector.load %arg8[%c0_18, %c0_19] : memref<6x120xbf16, #tpu.memory_space<vmem>>, vector<6x120xbf16>
    %25 = arith.truncf %23 : vector<120x128xf32> to vector<120x128xbf16>
    %cst_20 = arith.constant dense<0.000000e+00> : vector<6x128xf32>
    %26 = tpu.matmul %24, %25, %cst_20 {dimension_numbers = #tpu.dot_dimension_numbers<[1], [0], [0], [1], [0, 0, 1, 1], [], []>} : vector<6x120xbf16>, vector<120x128xbf16>, vector<6x128xf32> -> vector<6x128xf32>
    %c0_21 = arith.constant 0 : index
    %c0_22 = arith.constant 0 : index
    %27 = vector.load %arg9[%c0_21, %c0_22] : memref<6x1xf32, #tpu.memory_space<vmem>>, vector<6x1xf32>
    %28 = vector.broadcast %27 : vector<6x1xf32> to vector<6x128xf32>
    %29 = arith.addf %26, %28 : vector<6x128xf32>
    %cst_23 = arith.constant 5.000000e-01 : f32
    %30 = vector.broadcast %cst_23 : f32 to vector<6x128xf32>
    %31 = arith.mulf %30, %29 : vector<6x128xf32>
    %32 = math.tanh %31 : vector<6x128xf32>
    %cst_24 = arith.constant 1.000000e+00 : f32
    %33 = vector.broadcast %cst_24 : f32 to vector<6x128xf32>
    %34 = arith.addf %33, %32 : vector<6x128xf32>
    %cst_25 = arith.constant 5.000000e-01 : f32
    %35 = vector.broadcast %cst_25 : f32 to vector<6x128xf32>
    %36 = arith.mulf %35, %34 : vector<6x128xf32>
    %c0_26 = arith.constant 0 : index
    %c0_27 = arith.constant 0 : index
    %37 = vector.load %arg10[%c0_26, %c0_27] : memref<6x128xf32, #tpu.memory_space<vmem>>, vector<6x128xf32>
    tpu.vector_store %arg10[%c0_26, %c0_27], %36 {strides = array<i32>} : memref<6x128xf32, #tpu.memory_space<vmem>>, vector<6x128xf32>,
    return
  }
  func.func @transform_0(%arg0: i32) -> (i32, i32) {
    %c0_i32 = arith.constant 0 : i32
    %c0_i32_0 = arith.constant 0 : i32
    return %c0_i32, %arg0 : i32, i32
  }
  func.func @transform_1(%arg0: i32) -> (i32, i32) {
    %c0_i32 = arith.constant 0 : i32
    %c0_i32_0 = arith.constant 0 : i32
    %c0_i32_1 = arith.constant 0 : i32
    return %c0_i32, %c0_i32_0 : i32, i32
  }
  func.func @transform_2(%arg0: i32) -> (i32, i32) {
    %c0_i32 = arith.constant 0 : i32
    %c0_i32_0 = arith.constant 0 : i32
    %c0_i32_1 = arith.constant 0 : i32
    return %c0_i32, %c0_i32_0 : i32, i32
  }
  func.func @transform_3(%arg0: i32) -> (i32, i32) {
    %c0_i32 = arith.constant 0 : i32
    %c0_i32_0 = arith.constant 0 : i32
    %c0_i32_1 = arith.constant 0 : i32
    return %c0_i32, %c0_i32_0 : i32, i32
  }
  func.func @transform_4(%arg0: i32) -> (i32, i32) {
    %c0_i32 = arith.constant 0 : i32
    %c0_i32_0 = arith.constant 0 : i32
    %c0_i32_1 = arith.constant 0 : i32
    return %c0_i32, %c0_i32_0 : i32, i32
  }
  func.func @transform_5(%arg0: i32) -> (i32, i32) {
    %c0_i32 = arith.constant 0 : i32
    %c0_i32_0 = arith.constant 0 : i32
    %c0_i32_1 = arith.constant 0 : i32
    return %c0_i32, %c0_i32_0 : i32, i32
  }
  func.func @transform_6(%arg0: i32) -> (i32, i32) {
    %c0_i32 = arith.constant 0 : i32
    %c0_i32_0 = arith.constant 0 : i32
    %c0_i32_1 = arith.constant 0 : i32
    return %c0_i32, %c0_i32_0 : i32, i32
  }
  func.func @transform_7(%arg0: i32) -> (i32, i32) {
    %c0_i32 = arith.constant 0 : i32
    %c0_i32_0 = arith.constant 0 : i32
    %c0_i32_1 = arith.constant 0 : i32
    return %c0_i32, %c0_i32_0 : i32, i32
  }
  func.func @transform_8(%arg0: i32) -> (i32, i32) {
    %c0_i32 = arith.constant 0 : i32
    %c0_i32_0 = arith.constant 0 : i32
    %c0_i32_1 = arith.constant 0 : i32
    return %c0_i32, %c0_i32_0 : i32, i32
  }
  func.func @transform_9(%arg0: i32) -> (i32, i32) {
    %c0_i32 = arith.constant 0 : i32
    %c0_i32_0 = arith.constant 0 : i32
    return %c0_i32, %arg0 : i32, i32
  }
}

</mosaic_0001>

<bundles_post_ra>
// kernel: tpu_custom_call.1
= control target key start
LH: loop header
LB: loop body
LE: loop exit
PB: predicated region body
PF: predicated region fallthrough
CT: control target
= control target key end

     0   :  { %14 = vsyncpa [#allocation4], 0  ;;  %s1988_s0 = inlined_call_operand.vmem [shape: bf16[96,256], index: 0, kind: input, shape index: {}]   ;;  %s1989_s1 = inlined_call_operand.vmem [shape: bf16[120,96], index: 1, kind: input, shape index: {}]   ;;  %s1990_s2 = inlined_call_operand.vmem [shape: f32[120,1], index: 2, kind: input, shape index: {}]   ;;  %s1991_s3 = inlined_call_operand.vmem [shape: bf16[120,120], index: 3, kind: input, shape index: {}]   ;;  %s1992_s4 = inlined_call_operand.vmem [shape: f32[120,1], index: 4, kind: input, shape index: {}]   ;;  %s1993_s5 = inlined_call_operand.vmem [shape: bf16[120,120], index: 5, kind: input, shape index: {}]   ;;  %s1994_s6 = inlined_call_operand.vmem [shape: f32[120,1], index: 6, kind: input, shape index: {}]   ;;  %s1995_s7 = inlined_call_operand.vmem [shape: bf16[6,120], index: 7, kind: input, shape index: {}]   ;;  %s1996_s8 = inlined_call_operand.vmem [shape: f32[6,1], index: 8, kind: input, shape index: {}]   ;;  %s1997_s9 = inlined_call_operand.hbm [shape: f32[6,256], index: 9, kind: output, shape index: {}]  }
   0x1   :  { %16 = vsyncpa [#allocation4 + $0x1], 0  ;;  %s1634_s30 = smov 0   ;;  %s1636_s10 = smov 0  }
   0x2   :  { %s1638_s11 = smov 0   ;;  %s1640_s12 = smov 0  }
   0x3 LB: > { %s1301_s13 = sadd.s32 4294967295, %s1581_s12   ;;  %s1302_s14 = sadd.s32 4294967294, %s1581_s12   ;;  %s1581_s12 = sphi %s1640_s12, %s2003_s12   ;;  %s1577_s11 = sphi %s1638_s11, %s2002_s11   ;;  %s1573_s10 = sphi %s1636_s10, %s2001_s10   ;;  %s1569_s30 = sphi %s1634_s30, %s2000_s30  }
   0x4   : > { %s1657_s15 = sadd.s32 1, %s1581_s12   ;;  %s29_s16 = sadd.s32 1, %s1577_s11 }
   0x5   : > { %s26_s17 = ssub.s32 %s1581_s12, %s1657_s15  ;;  %p36_p0 = scmp.ne.s32.totalorder %s1577_s11, %s1573_s10 }
   0x6   : > { %p27_p1 = scmp.eq.s32.totalorder %s26_s17, 0  ;;  %p37_p2 = scmp.eq.s32.totalorder %s1581_s12, 0 }
   0x7   : > { %p234_p3 = scmp.eq.s32.totalorder %s1301_s13, 1  ;;  %p239_p4 = scmp.ne.s32.totalorder %s1573_s10, %s1569_s30 }
   0x8   : > { %s1670_s18 = scalar_select %p27_p1, %s1577_s11, %s29_s16  }
   0x9   : > { %p38_p5 = por %p37_p2, %p36_p0  ;;  %p1672_p6 = por %p234_p3, %p36_p0 }
   0xa   : > { %p240_p7 = scmp.eq.s32.totalorder %s1302_s14, 1  ;;  %p1304_p9 = scmp.ge.s32.totalorder %s1581_s12, 2 }
   0xc   : > { %p1676_p8 = por %p240_p7, %p239_p4  ;;  %280 = sbr.rel (%p1304_p9) target bundleno = 34 (0x22), region = 48 }
  0x11   : > { %283 = sbr.rel (!%p38_p5) target bundleno = 34 (0x22), region = 52  ;;  %s285_s21 = sand.u32 (%p38_p5), 1, %s1577_s11  }
  0x12   : > { %s1305_s22 = sshll.u32 (%p38_p5), %s1581_s12, 2  ;;  %s1472_s23 = smul.u32 (%p38_p5), 48, %s285_s21 }
  0x13   : > { %s289_s26 = scalar_lea.vmem (%p38_p5), %s1988_s0, %s1305_s22 }
  0x14   : > { %v306_v0 = vld [vmem:[%s289_s26] sm:$0xf] (%p38_p5)  ;;  %v308_v1 = vld [vmem:[%s289_s26 + $0x8] sm:$0xf] (%p38_p5)  ;;  %v310_v2 = vld [vmem:[%s289_s26 + $0x10] sm:$0xf] (%p38_p5) }
  0x15   : > { %s287_s27 = scalar_lea.vmem (%p38_p5), [#allocation2], %s1472_s23  ;;  %v312_v3 = vld [vmem:[%s289_s26 + $0x18] sm:$0xf] (%p38_p5)  ;;  %v314_v4 = vld [vmem:[%s289_s26 + $0x20] sm:$0xf] (%p38_p5) }
  0x16   : > { %307 = vst [vmem:[%s287_s27] sm:$0xf] %v306_v0  ;;  %v316_v5 = vld [vmem:[%s289_s26 + $0x28] sm:$0xf]  ;;  %v318_v6 = vld [vmem:[%s289_s26 + $0x30] sm:$0xf] }
  0x17   : > { %309 = vst [vmem:[%s287_s27 + $0x4] sm:$0xf] %v308_v1  ;;  %v320_v7 = vld [vmem:[%s289_s26 + $0x38] sm:$0xf]  ;;  %v322_v8 = vld [vmem:[%s289_s26 + $0x40] sm:$0xf] }
  0x18   : > { %311 = vst [vmem:[%s287_s27 + $0x8] sm:$0xf] %v310_v2  ;;  %v324_v9 = vld [vmem:[%s289_s26 + $0x48] sm:$0xf]  ;;  %v326_v10 = vld [vmem:[%s289_s26 + $0x50] sm:$0xf] }
  0x19   : > { %313 = vst [vmem:[%s287_s27 + $0xc] sm:$0xf] %v312_v3  ;;  %v328_v11 = vld [vmem:[%s289_s26 + $0x58] sm:$0xf] }
  0x1a   : > { %315 = vst [vmem:[%s287_s27 + $0x10] sm:$0xf] %v314_v4 }
  0x1b   : > { %317 = vst [vmem:[%s287_s27 + $0x14] sm:$0xf] %v316_v5 }
  0x1c   : > { %319 = vst [vmem:[%s287_s27 + $0x18] sm:$0xf] %v318_v6 }
  0x1d   : > { %321 = vst [vmem:[%s287_s27 + $0x1c] sm:$0xf] %v320_v7 }
  0x1e   : > { %323 = vst [vmem:[%s287_s27 + $0x20] sm:$0xf] %v322_v8 }
  0x1f   : > { %325 = vst [vmem:[%s287_s27 + $0x24] sm:$0xf] %v324_v9 }
  0x20   : > { %327 = vst [vmem:[%s287_s27 + $0x28] sm:$0xf] %v326_v10 }
  0x21   : > { %329 = vst [vmem:[%s287_s27 + $0x2c] sm:$0xf] %v328_v11 }
  0x22 PF: > { %p1306_p10 = scmp.ge.s32.totalorder %s1581_s12, 1  ;;  %p376_p11 = scmp.lt.s32.totalorder %s1581_s12, 3 }
  0x24   : > { %p377_p12 = pnand %p1306_p10, %p376_p11 }
  0x25   : > { %s1691_s28 = sand.u32 (!%p377_p12), 1, %s1573_s10  }
  0x26   : > { %380 = sbr.rel (%p377_p12) target bundleno = 1054 (0x41e), region = 93  ;;  %s1307_s17 = sshll.u32 (!%p377_p12), %s1691_s28, 3 }
  0x27   : > { %s1473_s16 = smul.u32 (!%p377_p12), 48, %s1691_s28  ;;  %s417_s23 = scalar_lea.vmem (!%p377_p12), [#allocation3], %s1307_s17 }
  0x28   : > { %s1234_s25 = sshll.u32 (!%p377_p12), %s417_s23, 4  ;;  %s1222_s27 = scalar_lea.sflag (!%p377_p12), [#allocation4], %s1691_s28  ;;  %s1235_s25 = int_to_ptr.vmem [resolvable:$true] %s1234_s25 }
  0x29   : > { %s385_s24 = scalar_lea.vmem (!%p377_p12), [#allocation2], %s1473_s16  ;;  %s1442_s16 = sshll.u32 (!%p377_p12), %s1301_s13, 3 }
  0x2a   : > { %s1232_s22 = scalar_lea.hbm (!%p377_p12), %s1997_s9, %s1442_s16  ;;  %s1539_s16 = scalar_lea.hbm (!%p377_p12), %s1997_s9, 16 }
  0x2b   : > { %v459_v12 = vld [vmem:[%s1990_s2 + $0x68] sm:$0xff]  ;;  %v1583_v13 = vmov 0   ;;  %v460_v14 = vld [vmem:[%s1990_s2 + $0x70] sm:$0xff]  ;;  %v457_v15 = vld [vmem:[%s1990_s2 + $0x58] sm:$0xff]  ;;  %vm610_vm0 = vcmask 785408   ;;  %vm874_vm1 = vcmask 1043456  }
  0x2c   : > { %1515 = vset.pattern.permute.xlu1 %v1583_v13  ;;  %1514 = vset.pattern.permute.xlu0 %v1583_v13  ;;  %v1450_v16 = vld [vmem:[%s385_s24 + $0x28] sm:$0xff]  ;;  %v1449_v17 = vld [vmem:[%s385_s24 + $0x20] sm:$0xff]  ;;  %v1448_v20 = vld [vmem:[%s385_s24 + $0x18] sm:$0xff]  ;;  %vm849_vm2 = vcmask 982016   ;;  %s1236_s26 = sshll.u32 %s1232_s22, 4  ;;  %s1237_s26 = int_to_ptr.hbm [resolvable:$true] %s1236_s26 }
  0x2d   : > { %528 = vperm.xlu1 %1515, %v459_v12   ;;  %533 = vperm.xlu0 %1514, %v460_v14   ;;  %v456_v18 = vld [vmem:[%s1990_s2 + $0x50] sm:$0xff]  ;;  %v458_v19 = vld [vmem:[%s1990_s2 + $0x60] sm:$0xff]  ;;  %v455_v24 = vld [vmem:[%s1990_s2 + $0x48] sm:$0xff]  ;;  %s1533_s29 = sshra.s32 %s1237_s26, 4  ;;  %s1534_s29 = int_to_ptr.hbm [resolvable:$true] %s1533_s29 }
  0x2e   : > { %1516 = vset.pattern.permute.xlu2 %v1583_v13  ;;  %637 = vmatpush.bf16.msra.mxu0 %v1450_v16  ;;  %v454_v21 = vld [vmem:[%s1990_s2 + $0x40] sm:$0xff]  ;;  %v452_v23 = vld [vmem:[%s1990_s2 + $0x30] sm:$0xff]  ;;  %v1446_v25 = vld [vmem:[%s385_s24 + $0x8] sm:$0xff]  ;;  %s1535_s14 = scalar_lea.hbm %s1534_s29, 8  ;;  %p1540_p2 = scmp.lt.s32.totalorder %s1534_s29, %s1997_s9 }
  0x2f   : > { %518 = vperm.xlu2 %1516, %v457_v15   ;;  %v1447_v22 = vld [vmem:[%s385_s24 + $0x10] sm:$0xff]  ;;  %v453_v26 = vld [vmem:[%s1990_s2 + $0x38] sm:$0xff]  ;;  %v1445_v27 = vld [vmem:[%s385_s24] sm:$0xff]  ;;  %p1536_p13 = scmp.ne.s32.totalorder %s1534_s29, %s1535_s14  ;;  %p1541_p3 = scmp.lt.s32.totalorder %s1539_s16, %s1535_s14 }
  0x30   : > { %v451_v28 = vld [vmem:[%s1990_s2 + $0x28] sm:$0xff]  ;;  %v450_v29 = vld [vmem:[%s1990_s2 + $0x20] sm:$0xff]  ;;  %v448_v31 = vld [vmem:[%s1990_s2 + $0x10] sm:$0xff] }
  0x31   : > { %v1451_v30 = vld [vmem:[%s1989_s1] sm:$0xff]  ;;  %v449_v33 = vld [vmem:[%s1990_s2 + $0x18] sm:$0xff]  ;;  %v447_v34 = vld [vmem:[%s1990_s2 + $0x8] sm:$0xff]  ;;  %p1537_p0 = pnand %p1536_p13, %p1672_p6  ;;  %p1542_p4 = por %p1541_p3, %p1540_p2 }
  0x32   : > { %638 = vmatpush.bf16.msra.mxu0 %v1449_v17  ;;  %v446_v32 = vld [vmem:[%s1990_s2] sm:$0xff]  ;;  %v735_v36 = vld [vmem:[%s1992_s4 + $0x70] sm:$0xff]  ;;  %v1452_v37 = vld [vmem:[%s1989_s1 + $0x8] sm:$0xff] }
  0x33   : > { %v733_v35 = vld [vmem:[%s1992_s4 + $0x60] sm:$0xff]  ;;  %v732_v38 = vld [vmem:[%s1992_s4 + $0x58] sm:$0xff]  ;;  %v731_v39 = vld [vmem:[%s1992_s4 + $0x50] sm:$0xff]  ;;  %p1538_p1 = pneg %p1537_p0 }
  0x34   : > { %v727_v40 = vld [vmem:[%s1992_s4 + $0x30] sm:$0xff]  ;;  %v730_v41 = vld [vmem:[%s1992_s4 + $0x48] sm:$0xff]  ;;  %v725_v45 = vld [vmem:[%s1992_s4 + $0x20] sm:$0xff] }
  0x35   : > { %513 = vperm.xlu1 %1515, %v456_v18   ;;  %523 = vperm.xlu0 %1514, %v458_v19   ;;  %v1453_v42 = vld [vmem:[%s1989_s1 + $0x10] sm:$0xff]  ;;  %v734_v43 = vld [vmem:[%s1992_s4 + $0x68] sm:$0xff]  ;;  %v729_v46 = vld [vmem:[%s1992_s4 + $0x40] sm:$0xff]  ;;  %p1543_p5 = pnand %p1542_p4, %p1538_p1 }
  0x36   : > { %639 = vmatpush.bf16.msra.mxu0 %v1448_v20  ;;  %v726_v44 = vld [vmem:[%s1992_s4 + $0x28] sm:$0xff]  ;;  %v721_v47 = vld [vmem:[%s1992_s4] sm:$0xff]  ;;  %v724_v48 = vld [vmem:[%s1992_s4 + $0x18] sm:$0xff] }
  0x37   : > { %503 = vperm.xlu2 %1516, %v454_v21   ;;  %v1454_v49 = vld [vmem:[%s1989_s1 + $0x18] sm:$0xff]  ;;  %v976_v51 = vld [vmem:[%s1994_s6 + $0x60] sm:$0xff]  ;;  %v978_v52 = vld [vmem:[%s1994_s6 + $0x70] sm:$0xff] }
  0x38   : > { %v728_v50 = vld [vmem:[%s1992_s4 + $0x38] sm:$0xff]  ;;  %v723_v53 = vld [vmem:[%s1992_s4 + $0x10] sm:$0xff]  ;;  %v1455_v56 = vld [vmem:[%s1989_s1 + $0x20] sm:$0xff] }
  0x39   : > { %v975_v54 = vld [vmem:[%s1994_s6 + $0x58] sm:$0xff]  ;;  %v974_v55 = vld [vmem:[%s1994_s6 + $0x50] sm:$0xff]  ;;  %v722_v57 = vld [vmem:[%s1992_s4 + $0x8] sm:$0xff] }
  0x3a   : > { %640 = vmatpush.bf16.msra.mxu0 %v1447_v22  ;;  %v970_v58 = vld [vmem:[%s1994_s6 + $0x30] sm:$0xff]  ;;  %v973_v59 = vld [vmem:[%s1994_s6 + $0x48] sm:$0xff]  ;;  %v968_v62 = vld [vmem:[%s1994_s6 + $0x20] sm:$0xff] }
  0x3b   : > { %v977_v60 = vld [vmem:[%s1994_s6 + $0x68] sm:$0xff]  ;;  %v972_v0 = vld [vmem:[%s1994_s6 + $0x40] sm:$0xff]  ;;  %v967_v2 = vld [vmem:[%s1994_s6 + $0x18] sm:$0xff] }
  0x3c   : > { %v969_v61 = vld [vmem:[%s1994_s6 + $0x28] sm:$0xff]  ;;  %v964_v1 = vld [vmem:[%s1994_s6] sm:$0xff]  ;;  %v1457_v6 = vld [vmem:[%s1989_s1 + $0x30] sm:$0xff] }
  0x3d   : > { %493 = vperm.xlu1 %1515, %v452_v23   ;;  %508 = vperm.xlu0 %1514, %v455_v24   ;;  %v1456_v63 = vld [vmem:[%s1989_s1 + $0x28] sm:$0xff]  ;;  %v1191_v5 = vld [vmem:[%s1996_s8] sm:$0x3f]  ;;  %v971_v7 = vld [vmem:[%s1994_s6 + $0x38] sm:$0xff] }
  0x3e   : > { %641 = vmatpush.bf16.msra.mxu0 %v1446_v25  ;;  %v445_v10 = vld [vmem:[%s1989_s1 + $0x38] sm:$0xf]  ;;  %v966_v11 = vld [vmem:[%s1994_s6 + $0x10] sm:$0xff]  ;;  %v965_v17 = vld [vmem:[%s1994_s6 + $0x8] sm:$0xff] }
  0x3f   : > { %498 = vperm.xlu2 %1516, %v453_v26   ;;  %v565_v12 = vunpack.c.l.b16 %v445_v10 }
  0x41   : > { %v573_v13 = vpack.c.b16 %v565_v12, %v565_v12 }
  0x42   : > { %642 = vmatpush.bf16.msra.mxu0 %v1445_v27 }
  0x45   : > { %488 = vperm.xlu1 %1515, %v451_v28   ;;  %483 = vperm.xlu0 %1514, %v450_v29  }
  0x46   : > { %1360 = vmatmul.msk.bf16.vlgmr.msra.gmra.mxu0 %vm610_vm0, %v1451_v30 }
  0x47   : > { %473 = vperm.xlu2 %1516, %v448_v31  }
  0x4d   : > { %463 = vperm.xlu1 %1515, %v446_v32   ;;  %478 = vperm.xlu0 %1514, %v449_v33  }
  0x4f   : > { %468 = vperm.xlu2 %1516, %v447_v34  }
  0x55   : > { %798 = vperm.xlu1 %1515, %v733_v35   ;;  %808 = vperm.xlu0 %1514, %v735_v36  }
  0x56   : > { %1361 = vmatmul.msk.bf16.gmra.mxu0 %vm610_vm0, %v1452_v37 }
  0x57   : > { %803 = vperm.xlu2 %1516, %v734_v43  }
  0x5d   : > { %793 = vperm.xlu1 %1515, %v732_v38   ;;  %788 = vperm.xlu0 %1514, %v731_v39  }
  0x5f   : > { %778 = vperm.xlu2 %1516, %v729_v46  }
  0x65   : > { %768 = vperm.xlu1 %1515, %v727_v40   ;;  %783 = vperm.xlu0 %1514, %v730_v41  }
  0x66   : > { %1362 = vmatmul.msk.bf16.gmra.mxu0 %vm610_vm0, %v1453_v42 }
  0x67   : > { %773 = vperm.xlu2 %1516, %v728_v50  }
  0x6d   : > { %763 = vperm.xlu1 %1515, %v726_v44   ;;  %758 = vperm.xlu0 %1514, %v725_v45  }
  0x6f   : > { %748 = vperm.xlu2 %1516, %v723_v53  }
  0x75   : > { %738 = vperm.xlu1 %1515, %v721_v47   ;;  %753 = vperm.xlu0 %1514, %v724_v48  }
  0x76   : > { %1363 = vmatmul.msk.bf16.gmra.mxu0 %vm610_vm0, %v1454_v49 }
  0x77   : > { %743 = vperm.xlu2 %1516, %v722_v57  }
  0x7d   : > { %1041 = vperm.xlu1 %1515, %v976_v51   ;;  %1051 = vperm.xlu0 %1514, %v978_v52  }
  0x7f   : > { %1046 = vperm.xlu2 %1516, %v977_v60  }
  0x85   : > { %1036 = vperm.xlu1 %1515, %v975_v54   ;;  %1031 = vperm.xlu0 %1514, %v974_v55  }
  0x86   : > { %1364 = vmatmul.msk.bf16.gmra.mxu0 %vm610_vm0, %v1455_v56 }
  0x87   : > { %1021 = vperm.xlu2 %1516, %v972_v0  }
  0x89   : > { %v1846_v4 = vpop.permute.xlu2 %518 }
  0x8d   : > { %1011 = vperm.xlu1 %1515, %v970_v58   ;;  %1026 = vperm.xlu0 %1514, %v973_v59  }
  0x8f   : > { %1016 = vperm.xlu2 %1516, %v971_v7  }
  0x91   : > { %v1860_v9 = vpop.permute.xlu2 %503 }
  0x95   : > { %1006 = vperm.xlu1 %1515, %v969_v61   ;;  %1001 = vperm.xlu0 %1514, %v968_v62  }
  0x96   : > { %1365 = vmatmul.msk.bf16.gmra.mxu0 %vm610_vm0, %v1456_v63 }
  0x97   : > { %991 = vperm.xlu2 %1516, %v966_v11  }
  0x99   : > { %v499_v16 = vpop.permute.xlu2 %498 }
  0x9d   : > { %981 = vperm.xlu1 %1515, %v964_v1   ;;  %996 = vperm.xlu0 %1514, %v967_v2  }
  0x9f   : > { %v1844_v3 = vpop.permute.xlu1 %528  ;;  %v534_v15 = vpop.permute.xlu0 %533  ;;  %986 = vperm.xlu2 %1516, %v965_v17  }
  0xa1   : > { %v474_v20 = vpop.permute.xlu2 %473 }
  0xa5   : > { %1194 = vperm.xlu0 %1514, %v1191_v5  }
  0xa6   : > { %1366 = vmatmul.msk.bf16.gmra.mxu0 %vm610_vm0, %v1457_v6 }
  0xa7   : > { %v1858_v8 = vpop.permute.xlu1 %513  ;;  %v524_v19 = vpop.permute.xlu0 %523 }
  0xa9   : > { %v469_v24 = vpop.permute.xlu2 %468 }
  0xaf   : > { %v494_v14 = vpop.permute.xlu1 %493  ;;  %v509_v23 = vpop.permute.xlu0 %508 }
  0xb6   : > { %1367 = vmatmul.msk.bf16.gmra.mxu0 %vm610_vm0, %v573_v13 }
  0xb7   : > { %v489_v18 = vpop.permute.xlu1 %488  ;;  %v484_v31 = vpop.permute.xlu0 %483 }
  0xbf   : > { %v464_v22 = vpop.permute.xlu1 %463  ;;  %v479_v34 = vpop.permute.xlu0 %478 }
  0xc3   : > { %v644_v21 = vpop.f32.mrf.mxu0 }
  0xc4   : > { %v645_v25 = vadd.f32 %v644_v21, %v464_v22  ;;  %v1462_v21 = vld [vmem:[%s1991_s3 + $0x20] sm:$0xff]  ;;  %v1463_v22 = vld [vmem:[%s1991_s3 + $0x28] sm:$0xff] }
  0xc6   : > { %v683_v28 = vmax.f32 %v645_v25, 0.0  ;;  %v804_v25 = vpop.permute.xlu2 %803 }
  0xcb   : > { %v646_v26 = vpop.f32.mrf.mxu0 }
  0xcc   : > { %v647_v27 = vadd.f32 %v646_v26, %v469_v24  ;;  %v1464_v24 = vld [vmem:[%s1991_s3 + $0x30] sm:$0xff] }
  0xce   : > { %v684_v29 = vmax.f32 %v647_v27, 0.0  ;;  %v712_v27 = vld [vmem:[%s1991_s3 + $0x38] sm:$0xf] }
  0xd0   : > { %v713_v30 = vpack.c.bf16 %v684_v29, %v683_v28  ;;  %v1908_v28 = vpop.permute.xlu2 %778  ;;  %v840_v29 = vunpack.c.l.b16 %v712_v27 }
  0xd3   : > { %v649_v32 = vpop.f32.mrf.mxu0 }
  0xd4   : > { %v650_v33 = vadd.f32 %v649_v32, %v474_v20  ;;  %v1461_v20 = vld [vmem:[%s1991_s3 + $0x18] sm:$0xff] }
  0xd6   : > { %v685_v37 = vmax.f32 %v650_v33, 0.0 }
  0xd8   : > { %v774_v33 = vpop.permute.xlu2 %773 }
  0xdb   : > { %v651_v35 = vpop.f32.mrf.mxu0 }
  0xdc   : > { %v652_v36 = vadd.f32 %v651_v35, %v479_v34 }
  0xde   : > { %v686_v38 = vmax.f32 %v652_v36, 0.0 }
  0xe0   : > { %v714_v39 = vpack.c.bf16 %v686_v38, %v685_v37  ;;  %v749_v36 = vpop.permute.xlu2 %748 }
  0xe3   : > { %v654_v40 = vpop.f32.mrf.mxu0 }
  0xe4   : > { %v655_v41 = vadd.f32 %v654_v40, %v484_v31  ;;  %v809_v31 = vpop.permute.xlu0 %808 }
  0xe6   : > { %v687_v44 = vmax.f32 %v655_v41, 0.0 }
  0xe8   : > { %v744_v41 = vpop.permute.xlu2 %743 }
  0xeb   : > { %v656_v42 = vpop.f32.mrf.mxu0 }
  0xec   : > { %v657_v43 = vadd.f32 %v656_v42, %v489_v18  ;;  %v789_v34 = vpop.permute.xlu0 %788 }
  0xee   : > { %v688_v45 = vmax.f32 %v657_v43, 0.0 }
  0xf0   : > { %v715_v46 = vpack.c.bf16 %v688_v45, %v687_v44 }
  0xf3   : > { %v659_v47 = vpop.f32.mrf.mxu0 }
  0xf4   : > { %v660_v48 = vadd.f32 %v659_v47, %v494_v14  ;;  %v784_v38 = vpop.permute.xlu0 %783 }
  0xf6   : > { %v689_v51 = vmax.f32 %v660_v48, 0.0 }
  0xfb   : > { %v661_v49 = vpop.f32.mrf.mxu0 }
  0xfc   : > { %v662_v50 = vadd.f32 %v661_v49, %v499_v16  ;;  %v759_v47 = vpop.permute.xlu0 %758 }
  0xfe   : > { %v690_v52 = vmax.f32 %v662_v50, 0.0 }
 0x100   : > { %v716_v53 = vpack.c.bf16 %v690_v52, %v689_v51 }
 0x103   : > { %v664_v54 = vpop.f32.mrf.mxu0 }
 0x104   : > { %v754_v50 = vpop.permute.xlu0 %753 }
 0x10b   : > { %v666_v55 = vpop.f32.mrf.mxu0 }
 0x10c   : > { %v667_v12 = vadd.f32 %v666_v55, %v509_v23  ;;  %v799_v23 = vpop.permute.xlu1 %798 }
 0x10e   : > { %v692_v16 = vmax.f32 %v667_v12, 0.0 }
 0x113   : > { %v669_v56 = vpop.f32.mrf.mxu0 }
 0x114   : > { %v670_v7 = vadd.f32 %v669_v56, %v1858_v8  ;;  %v1458_v8 = vld [vmem:[%s1991_s3] sm:$0xff]  ;;  %v794_v26 = vpop.permute.xlu1 %793 }
 0x11b   : > { %v671_v57 = vpop.f32.mrf.mxu0 }
 0x11c   : > { %v672_v2 = vadd.f32 %v671_v57, %v1846_v4  ;;  %v769_v32 = vpop.permute.xlu1 %768 }
 0x11e   : > { %v694_v13 = vmax.f32 %v672_v2, 0.0 }
 0x123   : > { %v674_v58 = vpop.f32.mrf.mxu0 }
 0x124   : > { %v675_v0 = vadd.f32 %v674_v58, %v524_v19  ;;  %v1460_v19 = vld [vmem:[%s1991_s3 + $0x10] sm:$0xff]  ;;  %v764_v35 = vpop.permute.xlu1 %763 }
 0x126   : > { %v695_v10 = vmax.f32 %v675_v0, 0.0 }
 0x12b   : > { %v676_v59 = vpop.f32.mrf.mxu0 }
 0x12c   : > { %v677_v62 = vadd.f32 %v676_v59, %v1844_v3  ;;  %v693_v3 = vmax.f32 %v670_v7, 0.0 }
 0x12e   : > { %v696_v5 = vmax.f32 %v677_v62, 0.0  ;;  %v718_v17 = vpack.c.bf16 %v694_v13, %v693_v3 }
 0x130   : > { %v719_v14 = vpack.c.bf16 %v696_v5, %v695_v10 }
 0x133   : > { %v679_v60 = vpop.f32.mrf.mxu0 }
 0x134   : > { %v680_v61 = vadd.f32 %v679_v60, %v534_v15  ;;  %v665_v15 = vadd.f32 %v664_v54, %v1860_v9  ;;  %v1459_v9 = vld [vmem:[%s1991_s3 + $0x8] sm:$0xff] }
 0x136   : > { %v697_v63 = vmax.f32 %v680_v61, 0.0  ;;  %v691_v18 = vmax.f32 %v665_v15, 0.0 }
 0x138   : > { %v720_v1 = vpack.c.bf16 %v697_v63, %v697_v63  ;;  %v717_v4 = vpack.c.bf16 %v692_v16, %v691_v18 }
 0x13a   : > { %v876_v6 = vsel %vm874_vm1, %v720_v1, 0 }
 0x13b   : > { %v681_v11 = vpop.f32.mrf.mxu0  ;;  %878 = vmatpush.bf16.msra.mxu1 %v876_v6 }
 0x13f   : > { %879 = vmatpush.bf16.msra.mxu1 %v719_v14 }
 0x143   : > { %880 = vmatpush.bf16.msra.mxu1 %v718_v17 }
 0x147   : > { %881 = vmatpush.bf16.msra.mxu1 %v717_v4 }
 0x14b   : > { %882 = vmatpush.bf16.msra.mxu1 %v716_v53 }
 0x14f   : > { %883 = vmatpush.bf16.msra.mxu1 %v715_v46 }
 0x153   : > { %884 = vmatpush.bf16.msra.mxu1 %v714_v39  ;;  %v739_v39 = vpop.permute.xlu1 %738 }
 0x157   : > { %885 = vmatpush.bf16.msra.mxu1 %v713_v30  ;;  %v848_v30 = vpack.c.b16 %v840_v29, %v840_v29 }
 0x15a   : > { %1396 = vmatmul.msk.bf16.vlgmr.msra.gmra.mxu1 %vm849_vm2, %v1458_v8 }
 0x16a   : > { %1397 = vmatmul.msk.bf16.gmra.mxu1 %vm849_vm2, %v1459_v9 }
 0x17a   : > { %1398 = vmatmul.msk.bf16.gmra.mxu1 %vm849_vm2, %v1460_v19 }
 0x18a   : > { %1399 = vmatmul.msk.bf16.gmra.mxu1 %vm849_vm2, %v1461_v20 }
 0x19a   : > { %1400 = vmatmul.msk.bf16.gmra.mxu1 %vm849_vm2, %v1462_v21 }
 0x1aa   : > { %1401 = vmatmul.msk.bf16.gmra.mxu1 %vm849_vm2, %v1463_v22 }
 0x1ba   : > { %1402 = vmatmul.msk.bf16.gmra.mxu1 %vm849_vm2, %v1464_v24 }
 0x1ca   : > { %1403 = vmatmul.msk.bf16.gmra.mxu1 %vm849_vm2, %v848_v30 }
 0x1d7   : > { %v887_v37 = vpop.f32.mrf.mxu1 }
 0x1d8   : > { %v888_v40 = vadd.f32 %v887_v37, %v739_v39  ;;  %v1469_v37 = vld [vmem:[%s1993_s5 + $0x20] sm:$0xff]  ;;  %v1471_v39 = vld [vmem:[%s1993_s5 + $0x30] sm:$0xff] }
 0x1da   : > { %v926_v44 = vmax.f32 %v888_v40, 0.0  ;;  %v1042_v40 = vpop.permute.xlu1 %1041 }
 0x1df   : > { %v889_v42 = vpop.f32.mrf.mxu1 }
 0x1e0   : > { %v890_v43 = vadd.f32 %v889_v42, %v744_v41  ;;  %v1047_v41 = vpop.permute.xlu2 %1046  ;;  %v955_v42 = vld [vmem:[%s1993_s5 + $0x38] sm:$0xf] }
 0x1e2   : > { %v927_v45 = vmax.f32 %v890_v43, 0.0  ;;  %v1083_v43 = vunpack.c.l.b16 %v955_v42 }
 0x1e4   : > { %v956_v46 = vpack.c.bf16 %v927_v45, %v926_v44  ;;  %v1037_v44 = vpop.permute.xlu1 %1036  ;;  %v1091_v45 = vpack.c.b16 %v1083_v43, %v1083_v43 }
 0x1e7   : > { %v892_v48 = vpop.f32.mrf.mxu1 }
 0x1e8   : > { %v893_v49 = vadd.f32 %v892_v48, %v749_v36  ;;  %v1468_v36 = vld [vmem:[%s1993_s5 + $0x18] sm:$0xff] }
 0x1ea   : > { %v928_v53 = vmax.f32 %v893_v49, 0.0 }
 0x1ec   : > { %v1012_v48 = vpop.permute.xlu1 %1011 }
 0x1ef   : > { %v894_v51 = vpop.f32.mrf.mxu1 }
 0x1f0   : > { %v895_v52 = vadd.f32 %v894_v51, %v754_v50 }
 0x1f2   : > { %v929_v54 = vmax.f32 %v895_v52, 0.0 }
 0x1f4   : > { %v957_v55 = vpack.c.bf16 %v929_v54, %v928_v53  ;;  %v1007_v51 = vpop.permute.xlu1 %1006 }
 0x1f7   : > { %v897_v56 = vpop.f32.mrf.mxu1 }
 0x1f8   : > { %v898_v57 = vadd.f32 %v897_v56, %v759_v47  ;;  %v1052_v47 = vpop.permute.xlu0 %1051 }
 0x1fa   : > { %v930_v60 = vmax.f32 %v898_v57, 0.0 }
 0x1ff   : > { %v899_v58 = vpop.f32.mrf.mxu1 }
 0x200   : > { %v900_v59 = vadd.f32 %v899_v58, %v764_v35  ;;  %v1032_v50 = vpop.permute.xlu0 %1031 }
 0x202   : > { %v931_v61 = vmax.f32 %v900_v59, 0.0 }
 0x204   : > { %v958_v62 = vpack.c.bf16 %v931_v61, %v930_v60 }
 0x207   : > { %v902_v63 = vpop.f32.mrf.mxu1 }
 0x208   : > { %v903_v0 = vadd.f32 %v902_v63, %v769_v32  ;;  %v1027_v54 = vpop.permute.xlu0 %1026 }
 0x20a   : > { %v932_v5 = vmax.f32 %v903_v0, 0.0 }
 0x20f   : > { %v904_v1 = vpop.f32.mrf.mxu1 }
 0x210   : > { %v905_v2 = vadd.f32 %v904_v1, %v774_v33  ;;  %v1002_v63 = vpop.permute.xlu0 %1001 }
 0x212   : > { %v933_v6 = vmax.f32 %v905_v2, 0.0 }
 0x214   : > { %v959_v7 = vpack.c.bf16 %v933_v6, %v932_v5 }
 0x217   : > { %v907_v10 = vpop.f32.mrf.mxu1 }
 0x218   : > { %v908_v32 = vadd.f32 %v907_v10, %v1908_v28  ;;  %v1466_v28 = vld [vmem:[%s1993_s5 + $0x8] sm:$0xff]  ;;  %v997_v2 = vpop.permute.xlu0 %996 }
 0x21a   : > { %v934_v35 = vmax.f32 %v908_v32, 0.0 }
 0x21f   : > { %v909_v11 = vpop.f32.mrf.mxu1 }
 0x220   : > { %v910_v27 = vadd.f32 %v909_v11, %v784_v38  ;;  %v1470_v38 = vld [vmem:[%s1993_s5 + $0x28] sm:$0xff] }
 0x227   : > { %v912_v12 = vpop.f32.mrf.mxu1 }
 0x228   : > { %v913_v21 = vadd.f32 %v912_v12, %v789_v34  ;;  %v1467_v34 = vld [vmem:[%s1993_s5 + $0x10] sm:$0xff] }
 0x22a   : > { %v936_v33 = vmax.f32 %v913_v21, 0.0 }
 0x22f   : > { %v914_v13 = vpop.f32.mrf.mxu1 }
 0x230   : > { %v915_v9 = vadd.f32 %v914_v13, %v794_v26  ;;  %v1465_v26 = vld [vmem:[%s1993_s5] sm:$0xff] }
 0x232   : > { %v937_v29 = vmax.f32 %v915_v9, 0.0 }
 0x237   : > { %v917_v14 = vpop.f32.mrf.mxu1 }
 0x238   : > { %v918_v4 = vadd.f32 %v917_v14, %v799_v23 }
 0x23a   : > { %v938_v22 = vmax.f32 %v918_v4, 0.0 }
 0x23f   : > { %v919_v15 = vpop.f32.mrf.mxu1 }
 0x240   : > { %v920_v17 = vadd.f32 %v919_v15, %v804_v25  ;;  %v961_v25 = vpack.c.bf16 %v937_v29, %v936_v33 }
 0x242   : > { %v939_v19 = vmax.f32 %v920_v17, 0.0 }
 0x244   : > { %v962_v30 = vpack.c.bf16 %v939_v19, %v938_v22 }
 0x247   : > { %v922_v3 = vpop.f32.mrf.mxu1 }
 0x248   : > { %v923_v16 = vadd.f32 %v922_v3, %v809_v31  ;;  %v935_v31 = vmax.f32 %v910_v27, 0.0 }
 0x24a   : > { %v940_v18 = vmax.f32 %v923_v16, 0.0  ;;  %v960_v23 = vpack.c.bf16 %v935_v31, %v934_v35 }
 0x24c   : > { %v963_v8 = vpack.c.bf16 %v940_v18, %v940_v18 }
 0x24e   : > { %v1117_v20 = vsel %vm874_vm1, %v963_v8, 0 }
 0x24f   : > { %v924_v24 = vpop.f32.mrf.mxu1  ;;  %1119 = vmatpush.bf16.msra.mxu2 %v1117_v20 }
 0x253   : > { %1120 = vmatpush.bf16.msra.mxu2 %v962_v30 }
 0x257   : > { %1121 = vmatpush.bf16.msra.mxu2 %v961_v25 }
 0x25b   : > { %1122 = vmatpush.bf16.msra.mxu2 %v960_v23 }
 0x25f   : > { %1123 = vmatpush.bf16.msra.mxu2 %v959_v7 }
 0x263   : > { %1124 = vmatpush.bf16.msra.mxu2 %v958_v62 }
 0x267   : > { %1125 = vmatpush.bf16.msra.mxu2 %v957_v55  ;;  %v982_v55 = vpop.permute.xlu1 %981 }
 0x26b   : > { %1126 = vmatpush.bf16.msra.mxu2 %v956_v46  ;;  %v1944_v46 = vpop.permute.xlu2 %1021 }
 0x26e   : > { %1432 = vmatmul.msk.bf16.vlgmr.msra.gmra.mxu2 %vm849_vm2, %v1465_v26 }
 0x273   : > { %v1017_v49 = vpop.permute.xlu2 %1016 }
 0x27b   : > { %v992_v52 = vpop.permute.xlu2 %991 }
 0x27e   : > { %1433 = vmatmul.msk.bf16.gmra.mxu2 %vm849_vm2, %v1466_v28 }
 0x283   : > { %v987_v57 = vpop.permute.xlu2 %986 }
 0x28e   : > { %1434 = vmatmul.msk.bf16.gmra.mxu2 %vm849_vm2, %v1467_v34 }
 0x29e   : > { %1435 = vmatmul.msk.bf16.gmra.mxu2 %vm849_vm2, %v1468_v36 }
 0x2ae   : > { %1436 = vmatmul.msk.bf16.gmra.mxu2 %vm849_vm2, %v1469_v37 }
 0x2be   : > { %1437 = vmatmul.msk.bf16.gmra.mxu2 %vm849_vm2, %v1470_v38 }
 0x2ce   : > { %1438 = vmatmul.msk.bf16.gmra.mxu2 %vm849_vm2, %v1471_v39 }
 0x2de   : > { %1439 = vmatmul.msk.bf16.gmra.mxu2 %vm849_vm2, %v1091_v45 }
 0x2f1   : > { %v1128_v53 = vpop.f32.mrf.mxu2 }
 0x2f2   : > { %v1129_v56 = vadd.f32 %v1128_v53, %v982_v55 }
 0x2f4   : > { %v1167_v60 = vmax.f32 %v1129_v56, 0.0 }
 0x2f9   : > { %v1130_v58 = vpop.f32.mrf.mxu2 }
 0x2fa   : > { %v1131_v59 = vadd.f32 %v1130_v58, %v987_v57 }
 0x2fc   : > { %v1168_v61 = vmax.f32 %v1131_v59, 0.0 }
 0x2fe   : > { %v1183_v62 = vpack.c.bf16 %v1168_v61, %v1167_v60 }
 0x301   : > { %v1133_v0 = vpop.f32.mrf.mxu2 }
 0x302   : > { %v1134_v1 = vadd.f32 %v1133_v0, %v992_v52 }
 0x304   : > { %v1169_v7 = vmax.f32 %v1134_v1, 0.0 }
 0x309   : > { %v1135_v5 = vpop.f32.mrf.mxu2 }
 0x30a   : > { %v1136_v6 = vadd.f32 %v1135_v5, %v997_v2 }
 0x30c   : > { %v1170_v10 = vmax.f32 %v1136_v6, 0.0 }
 0x30e   : > { %v1184_v11 = vpack.c.bf16 %v1170_v10, %v1169_v7 }
 0x311   : > { %v1138_v12 = vpop.f32.mrf.mxu2 }
 0x312   : > { %v1139_v13 = vadd.f32 %v1138_v12, %v1002_v63 }
 0x314   : > { %v1171_v3 = vmax.f32 %v1139_v13, 0.0 }
 0x319   : > { %v1140_v14 = vpop.f32.mrf.mxu2 }
 0x31a   : > { %v1141_v15 = vadd.f32 %v1140_v14, %v1007_v51 }
 0x31c   : > { %v1172_v16 = vmax.f32 %v1141_v15, 0.0 }
 0x31e   : > { %v1185_v17 = vpack.c.bf16 %v1172_v16, %v1171_v3 }
 0x321   : > { %v1143_v18 = vpop.f32.mrf.mxu2 }
 0x322   : > { %v1144_v4 = vadd.f32 %v1143_v18, %v1012_v48 }
 0x324   : > { %v1173_v19 = vmax.f32 %v1144_v4, 0.0 }
 0x329   : > { %v1145_v8 = vpop.f32.mrf.mxu2 }
 0x32a   : > { %v1146_v9 = vadd.f32 %v1145_v8, %v1017_v49 }
 0x32c   : > { %v1174_v20 = vmax.f32 %v1146_v9, 0.0 }
 0x32e   : > { %v1186_v21 = vpack.c.bf16 %v1174_v20, %v1173_v19 }
 0x331   : > { %v1148_v22 = vpop.f32.mrf.mxu2 }
 0x332   : > { %v1149_v48 = vadd.f32 %v1148_v22, %v1944_v46  ;;  %v1195_v46 = vpop.permute.xlu0 %1194 }
 0x339   : > { %v1150_v24 = vpop.f32.mrf.mxu2 }
 0x33a   : > { %v1151_v42 = vadd.f32 %v1150_v24, %v1027_v54 }
 0x341   : > { %v1153_v27 = vpop.f32.mrf.mxu2 }
 0x342   : > { %v1154_v37 = vadd.f32 %v1153_v27, %v1032_v50  ;;  %v1182_v50 = vld [vmem:[%s1995_s7] sm:$0x7] }
 0x344   : > { %v1177_v49 = vmax.f32 %v1154_v37, 0.0 }
 0x349   : > { %v1155_v29 = vpop.f32.mrf.mxu2 }
 0x34a   : > { %v1156_v28 = vadd.f32 %v1155_v29, %v1037_v44 }
 0x34c   : > { %v1178_v43 = vmax.f32 %v1156_v28, 0.0 }
 0x351   : > { %v1158_v30 = vpop.f32.mrf.mxu2 }
 0x352   : > { %v1159_v23 = vadd.f32 %v1158_v30, %v1042_v40  ;;  %v1175_v40 = vmax.f32 %v1149_v48, 0.0 }
 0x354   : > { %v1179_v38 = vmax.f32 %v1159_v23, 0.0 }
 0x359   : > { %v1160_v32 = vpop.f32.mrf.mxu2 }
 0x35a   : > { %v1161_v25 = vadd.f32 %v1160_v32, %v1047_v41  ;;  %v1188_v41 = vpack.c.bf16 %v1178_v43, %v1177_v49 }
 0x35c   : > { %v1180_v34 = vmax.f32 %v1161_v25, 0.0 }
 0x35e   : > { %v1189_v45 = vpack.c.bf16 %v1180_v34, %v1179_v38 }
 0x361   : > { %v1163_v33 = vpop.f32.mrf.mxu2 }
 0x362   : > { %v1164_v31 = vadd.f32 %v1163_v33, %v1052_v47  ;;  %v1176_v47 = vmax.f32 %v1151_v42, 0.0 }
 0x364   : > { %v1181_v35 = vmax.f32 %v1164_v31, 0.0  ;;  %v1187_v44 = vpack.c.bf16 %v1176_v47, %v1175_v40 }
 0x366   : > { %v1190_v26 = vpack.c.bf16 %v1181_v35, %v1181_v35 }
 0x368   : > { %v1201_v36 = vsel %vm874_vm1, %v1190_v26, 0 }
 0x369   : > { %v1165_v39 = vpop.f32.mrf.mxu2  ;;  %1203 = vmatpush.bf16.msra.mxu3 %v1201_v36 }
 0x36d   : > { %1204 = vmatpush.bf16.msra.mxu3 %v1189_v45 }
 0x371   : > { %1205 = vmatpush.bf16.msra.mxu3 %v1188_v41 }
 0x375   : > { %1206 = vmatpush.bf16.msra.mxu3 %v1187_v44 }
 0x379   : > { %1207 = vmatpush.bf16.msra.mxu3 %v1186_v21 }
 0x37d   : > { %1208 = vmatpush.bf16.msra.mxu3 %v1185_v17 }
 0x381   : > { %1209 = vmatpush.bf16.msra.mxu3 %v1184_v11 }
 0x385   : > { %1210 = vmatpush.bf16.msra.mxu3 %v1183_v62 }
 0x388   : > { %1440 = vmatmul.msk.bf16.vlgmr.msra.gmra.mxu3 %vm849_vm2, %v1182_v50 }
 0x40b   : > { %v1212_v51 = vpop.f32.mrf.mxu3 }
 0x40c   : > { %v1213_v52 = vadd.f32 %v1212_v51, %v1195_v46 }
 0x40e   : > { %v1216_v53 = vmul.f32 0.5, %v1213_v52 }
 0x410   : > { %1517 = vtanh.f32 %v1216_v53 }
 0x413   : > { %v1214_v54 = vpop.f32.mrf.mxu3 }
 0x416   : > { %v1518_v55 = vpop.eup %1517 }
 0x417   : > { %v1218_v56 = vadd.f32 1.0, %v1518_v55 }
 0x419   : > { %v1219_v57 = vmul.f32 0.5, %v1218_v56 }
 0x41b   : > { %1220 = vst [vmem:[%s417_s23] sm:$0x3f] %v1219_v57 }
 0x41c   : > { %1546 = shalt.err (!%p1543_p5)
}
 0x41d   : > { %1474 = dma.vmem_to_hbm [thread:$0]  (%p1672_p6), %s1235_s25, 128, %s1237_s26, %s1222_s27  }
 0x41e PF: > { %s1248_s28 = sand.u32 1, %s1569_s30   ;;  %p1477_p7 = pnand %p1304_p9, %p1676_p8 }
 0x41f   : > { %s1249_s22 = scalar_lea.sflag [#allocation4], %s1248_s28 }
 0x420   : > { %p1478_p10 = pneg %p1477_p7 }
 0x422   : > { %1564 = dma.done.wait (%p1478_p10), %s1249_s22, 128  }
 0x423   : > { %1566 = vsyncadd (%p1478_p10), %s1249_s22, 4294967168  ;;  %p19_p11 = scmp.ge.s32.totalorder %s1657_s15, 4   ;;  %s2000_s30 = smov %s1573_s10 }
 0x424   : > { %s2001_s10 = smov %s1577_s11  ;;  %s2002_s11 = smov %s1670_s18 }
 0x425   : > { %s2003_s12 = smov %s1657_s15  ;;  %21 = sbr.rel (!%p19_p11) target bundleno = 3 (0x3), region = 137 }
 0x42a   :  { %1255 = vsyncpa [#allocation4], 1 }
 0x42b   :  { %1257 = vsyncpa [#allocation4 + $0x1], 1 }

</bundles_post_ra>
